<compile_context>
chip_gen: v6e
topology: v6e:2x2x1
jax: 0.10.0
libtpu: 0.0.40
codegen_flags: <defaults>
</compile_context>

<pallas_src>
import jax
import jax.numpy as jnp
from jax.experimental import pallas as pl
from jax.experimental.pallas import tpu as pltpu


# --------------------------------------------------------------------------
# helpers
# --------------------------------------------------------------------------
def _round_up(x, m):
    return ((x + m - 1) // m) * m


def _choose_bblk(B, max_bblk=8):
    """Largest divisor of B that is <= max_bblk and still leaves >= 2 grid steps
    (so both v7x TensorCores get work). Falls back to 1-step for B == 1."""
    best = 1
    for c in range(1, min(B, max_bblk) + 1):
        if B % c == 0 and (B // c >= 2 or B == 1):
            best = c
    return best


# --------------------------------------------------------------------------
# Fused Pallas kernel: all TemporalBlocks + final linear in one call
# --------------------------------------------------------------------------
def make_fused_tcn_kernel(T, Tp, Pa, K, Cp, Op, layer_meta):
    """T: valid seq length, Tp: time padded to mult of 8, Pa: causal-history rows
    (max padding rounded up to 8), Cp/Op: lane-padded channel / output sizes."""

    def kernel(*refs):
        it = iter(refs)
        x_ref = next(it)
        layer_refs = []
        for meta in layer_meta:
            n = 6 if meta["has_down"] else 4
            layer_refs.append([next(it) for _ in range(n)])
        lw_ref = next(it)
        lb_ref = next(it)
        o_ref = next(it)
        scr = next(it)                        # VMEM scratch (Bblk, Pa + Tp, Cp) f32

        Bblk = x_ref.shape[0]
        M = Bblk * Tp

        # Zero the causal-history rows once; they are never written afterwards, so the
        # left padding stays valid for every layer / both convs.
        scr[:, :Pa, :] = jnp.zeros((Bblk, Pa, Cp), jnp.float32)

        def causal_conv(w_ref, b_ref, d):
            """Dilated causal conv as ONE MXU matmul: im2col slab (M, K*Cp) x (K*Cp, Cp)."""
            P = (K - 1) * d
            taps = [scr[:, Pa - P + k * d: Pa - P + k * d + Tp, :] for k in range(K)]
            slab = jnp.concatenate(taps, axis=-1).reshape(M, K * Cp)
            out = jnp.dot(slab.astype(jnp.bfloat16), w_ref[...],
                          preferred_element_type=jnp.float32)
            return (out + b_ref[...]).reshape(Bblk, Tp, Cp)

        act = x_ref[...]                                  # (Bblk, Tp, Cp) f32, layers resident in VMEM
        for l, meta in enumerate(layer_meta):             # static unroll over layers
            d = meta["dilation"]
            if meta["has_down"]:
                w1, b1, w2, b2, wd, bd = layer_refs[l]
            else:
                w1, b1, w2, b2 = layer_refs[l]

            scr[:, Pa:, :] = act                          # stage layer input (causal-padded)
            h = jnp.maximum(causal_conv(w1, b1, d), 0.0)  # conv1 + relu  (dropout1 = identity)
            scr[:, Pa:, :] = h                            # stage conv1 output for conv2
            h = jnp.maximum(causal_conv(w2, b2, d), 0.0)  # conv2 + relu  (dropout2 = identity)

            if meta["has_down"]:                          # 1x1-conv residual projection
                res = jnp.dot(act.reshape(M, Cp).astype(jnp.bfloat16), wd[...],
                              preferred_element_type=jnp.float32)
                res = res.reshape(Bblk, Tp, Cp) + bd[...]
            else:
                res = act                                 # identity residual stays f32
            act = jnp.maximum(h + res, 0.0)

        # Fused final linear, applied only to the last *valid* timestep.
        h_last = act[:, T - 1, :]                         # (Bblk, Cp)
        o = jnp.dot(h_last.astype(jnp.bfloat16), lw_ref[...],
                    preferred_element_type=jnp.float32) + lb_ref[...]
        o_ref[:, 0, :] = o

    return kernel


# --------------------------------------------------------------------------
# Parameter preparation (padding + im2col weight layout + bf16 cast), done once
# --------------------------------------------------------------------------
def prepare_tcn_params(params, *, kernel_size):
    K = kernel_size
    blocks = params["blocks"]
    Cin0 = blocks[0]["w1"].shape[1]
    channels = [bp["w1"].shape[2] for bp in blocks]
    O = params["lin_w"].shape[1]
    Cp = _round_up(max([Cin0] + channels), 128)   # lane-dense channel size
    Op = _round_up(O, 128)                        # lane-dense output size

    def pad_conv_w(w):                            # (K, Cin, Cout) -> (K*Cp, Cp) bf16
        K_, ci, co = w.shape
        wp = jnp.zeros((K_, Cp, Cp), jnp.float32).at[:, :ci, :co].set(w)
        return wp.reshape(K_ * Cp, Cp).astype(jnp.bfloat16)

    def pad_bias(b, n):
        return jnp.zeros((1, n), jnp.float32).at[0, :b.shape[0]].set(b)

    arrays, layer_meta = [], []
    for i, bp in enumerate(blocks):
        arrays += [pad_conv_w(bp["w1"]), pad_bias(bp["b1"], Cp),
                   pad_conv_w(bp["w2"]), pad_bias(bp["b2"], Cp)]
        has_down = "wd" in bp
        if has_down:
            ci, co = bp["wd"].shape
            wd = jnp.zeros((Cp, Cp), jnp.float32).at[:ci, :co].set(bp["wd"])
            arrays += [wd.astype(jnp.bfloat16), pad_bias(bp["bd"], Cp)]
        layer_meta.append({"dilation": 2 ** i, "has_down": has_down})

    cl, o = params["lin_w"].shape
    lw = jnp.zeros((Cp, Op), jnp.float32).at[:cl, :o].set(params["lin_w"]).astype(jnp.bfloat16)
    lb = pad_bias(params["lin_b"], Op)
    arrays += [lw, lb]

    return {"arrays": arrays, "layer_meta": layer_meta,
            "K": K, "Cp": Cp, "Op": Op, "out_size": O}


# --------------------------------------------------------------------------
# Wrapper: one pallas_call for the whole network
# --------------------------------------------------------------------------
def tcn_forward(x, kparams, *, bblk=None):
    """x: (B, T, input_size) float32 -> (B, output_size) float32."""
    B, T, Cin = x.shape
    K, Cp, Op = kparams["K"], kparams["Cp"], kparams["Op"]
    layer_meta = kparams["layer_meta"]
    Tp = _round_up(T, 8)
    Pmax = (K - 1) * max(m["dilation"] for m in layer_meta)
    Pa = _round_up(max(Pmax, 1), 8)

    if bblk is None:
        bblk = _choose_bblk(B)
    assert B % bblk == 0
    nb = B // bblk

    # One-time layout pad: channels -> Cp (lane-dense), time -> multiple of 8.
    # Zero channel pads stay zero through all layers, so results are unchanged.
    xpad = jnp.zeros((B, Tp, Cp), jnp.float32).at[:, :T, :Cin].set(x)

    in_arrays = [xpad] + list(kparams["arrays"])
    in_specs = [pl.BlockSpec((bblk, Tp, Cp), lambda b: (b, 0, 0))]
    for meta in layer_meta:
        in_specs += [
            pl.BlockSpec((K * Cp, Cp), lambda b: (0, 0)),   # w1 (im2col layout, bf16)
            pl.BlockSpec((1, Cp), lambda b: (0, 0)),        # b1
            pl.BlockSpec((K * Cp, Cp), lambda b: (0, 0)),   # w2
            pl.BlockSpec((1, Cp), lambda b: (0, 0)),        # b2
        ]
        if meta["has_down"]:
            in_specs += [
                pl.BlockSpec((Cp, Cp), lambda b: (0, 0)),   # downsample 1x1
                pl.BlockSpec((1, Cp), lambda b: (0, 0)),
            ]
    in_specs += [pl.BlockSpec((Cp, Op), lambda b: (0, 0)),  # linear weight
                 pl.BlockSpec((1, Op), lambda b: (0, 0))]   # linear bias

    kernel = make_fused_tcn_kernel(T, Tp, Pa, K, Cp, Op, layer_meta)
    out = pl.pallas_call(
        kernel,
        out_shape=jax.ShapeDtypeStruct((B, 1, Op), jnp.float32),
        grid=(nb,),
        in_specs=in_specs,
        out_specs=pl.BlockSpec((bblk, 1, Op), lambda b: (b, 0, 0)),
        scratch_shapes=[pltpu.VMEM((bblk, Pa + Tp, Cp), jnp.float32)],
        compiler_params=pltpu.CompilerParams(
            dimension_semantics=("parallel",)),   # batch tiles are independent (v7x 2 TCs)
    )(*in_arrays)
    return out[:, 0, :kparams["out_size"]]


# --------------------------------------------------------------------------
# Deterministic parameter init (weight_norm applied here, in glue)
# --------------------------------------------------------------------------
def init_tcn_params(key, input_size, output_size, num_channels, kernel_size):
    def wn_weight(kv, kg, cout, cin, K):
        v = jax.random.normal(kv, (cout, cin, K), jnp.float32) * 0.3
        g = jax.random.uniform(kg, (cout,), jnp.float32, 0.5, 1.5)
        nrm = jnp.sqrt(jnp.sum(v * v, axis=(1, 2), keepdims=True)) + 1e-12
        w = g[:, None, None] * v / nrm        # (Cout, Cin, K) torch conv layout
        return jnp.transpose(w, (2, 1, 0))    # -> (K, Cin, Cout)

    blocks = []
    in_ch = input_size
    keys = jax.random.split(key, len(num_channels) * 8 + 2)
    ki = 0
    for out_ch in num_channels:
        bp = {}
        bp["w1"] = wn_weight(keys[ki], keys[ki + 1], out_ch, in_ch, kernel_size); ki += 2
        bp["b1"] = jax.random.normal(keys[ki], (out_ch,), jnp.float32) * 0.1; ki += 1
        bp["w2"] = wn_weight(keys[ki], keys[ki + 1], out_ch, out_ch, kernel_size); ki += 2
        bp["b2"] = jax.random.normal(keys[ki], (out_ch,), jnp.float32) * 0.1; ki += 1
        if in_ch != out_ch:                   # downsample 1x1 conv
            bp["wd"] = jax.random.normal(keys[ki], (in_ch, out_ch), jnp.float32) * 0.3; ki += 1
            bp["bd"] = jax.random.normal(keys[ki], (out_ch,), jnp.float32) * 0.1; ki += 1
        else:
            ki += 2
        blocks.append(bp)
        in_ch = out_ch
    lin_w = jax.random.normal(keys[-2], (num_channels[-1], output_size), jnp.float32) * 0.3
    lin_b = jax.random.normal(keys[-1], (output_size,), jnp.float32) * 0.1
    return {"blocks": blocks, "lin_w": lin_w, "lin_b": lin_b}


# --------------------------------------------------------------------------
# Pure-JAX reference (mirrors the kernel's bf16 matmul operands, f32 accumulate)
# --------------------------------------------------------------------------
def ref_forward(x, params, kernel_size, cast=jnp.bfloat16):
    c = (lambda v: v.astype(cast)) if cast is not None else (lambda v: v)
    h = x
    for i, bp in enumerate(params["blocks"]):
        d = 2 ** i
        P = (kernel_size - 1) * d
        T = h.shape[1]

        def causal_conv(z, w, b):
            zp = jnp.pad(z, ((0, 0), (P, 0), (0, 0)))
            out = jnp.zeros((z.shape[0], T, w.shape[-1]), jnp.float32)
            for k in range(kernel_size):
                out = out + jnp.einsum("btc,cd->btd",
                                       c(zp[:, k * d:k * d + T, :]), c(w[k]),
                                       preferred_element_type=jnp.float32)
            return out + b[None, None, :]

        a = jax.nn.relu(causal_conv(h, bp["w1"], bp["b1"]))
        a = jax.nn.relu(causal_conv(a, bp["w2"], bp["b2"]))
        if "wd" in bp:
            res = jnp.einsum("btc,cd->btd", c(h), c(bp["wd"]),
                             preferred_element_type=jnp.float32) + bp["bd"][None, None, :]
        else:
            res = h
        h = jax.nn.relu(a + res)
    return (jnp.einsum("bc,co->bo", c(h[:, -1, :]), c(params["lin_w"]),
                       preferred_element_type=jnp.float32) + params["lin_b"][None, :])


# --------------------------------------------------------------------------
if __name__ == "__main__":
    B, T = 2, 16
    input_size, output_size = 4, 3
    num_channels = [8, 8]        # layer 0 has a downsample (4->8), layer 1 does not
    kernel_size = 3

    key = jax.random.PRNGKey(0)
    kx, kp = jax.random.split(key)
    x = jax.random.normal(kx, (B, T, input_size), jnp.float32)
    params = init_tcn_params(kp, input_size, output_size, num_channels, kernel_size)
    kparams = prepare_tcn_params(params, kernel_size=kernel_size)

    fwd = jax.jit(lambda xx: tcn_forward(xx, kparams))
    out = jax.block_until_ready(fwd(x))
    ref = ref_forward(x, params, kernel_size)

    assert out.shape == (B, output_size), out.shape
    assert jnp.allclose(out, ref, atol=2e-2, rtol=2e-2), (out, ref)
    print("KERNEL_OK")
</pallas_src>

<mosaic_0001>
module attributes {stable_mosaic.version = 11 : i64} {
  func.func @kernel(%arg0: i32, %arg1: memref<1x16x128xf32, #tpu.memory_space<vmem>>, %arg2: memref<384x128xbf16, #tpu.memory_space<vmem>>, %arg3: memref<1x128xf32, #tpu.memory_space<vmem>>, %arg4: memref<384x128xbf16, #tpu.memory_space<vmem>>, %arg5: memref<1x128xf32, #tpu.memory_space<vmem>>, %arg6: memref<128x128xbf16, #tpu.memory_space<vmem>>, %arg7: memref<1x128xf32, #tpu.memory_space<vmem>>, %arg8: memref<384x128xbf16, #tpu.memory_space<vmem>>, %arg9: memref<1x128xf32, #tpu.memory_space<vmem>>, %arg10: memref<384x128xbf16, #tpu.memory_space<vmem>>, %arg11: memref<1x128xf32, #tpu.memory_space<vmem>>, %arg12: memref<128x128xbf16, #tpu.memory_space<vmem>>, %arg13: memref<1x128xf32, #tpu.memory_space<vmem>>, %arg14: memref<1x1x128xf32, #tpu.memory_space<vmem>>, %arg15: memref<1x24x128xf32, #tpu.memory_space<vmem>>) attributes {dimension_semantics = [#tpu.dimension_semantics<parallel>], iteration_bounds = array<i64: 2>, scalar_prefetch = 0 : i64, scratch_operands = 1 : i64, tpu.core_type = #tpu.core_type<tc>, window_params = [{transform_indices = @transform_0, window_bounds = array<i64: 1, 16, 128>}, {pipeline_mode = #tpu.pipeline_mode<synchronous>, transform_indices = @transform_1, window_bounds = array<i64: 384, 128>}, {pipeline_mode = #tpu.pipeline_mode<synchronous>, transform_indices = @transform_2, window_bounds = array<i64: 1, 128>}, {pipeline_mode = #tpu.pipeline_mode<synchronous>, transform_indices = @transform_3, window_bounds = array<i64: 384, 128>}, {pipeline_mode = #tpu.pipeline_mode<synchronous>, transform_indices = @transform_4, window_bounds = array<i64: 1, 128>}, {pipeline_mode = #tpu.pipeline_mode<synchronous>, transform_indices = @transform_5, window_bounds = array<i64: 128, 128>}, {pipeline_mode = #tpu.pipeline_mode<synchronous>, transform_indices = @transform_6, window_bounds = array<i64: 1, 128>}, {pipeline_mode = #tpu.pipeline_mode<synchronous>, transform_indices = @transform_7, window_bounds = array<i64: 384, 128>}, {pipeline_mode = #tpu.pipeline_mode<synchronous>, transform_indices = @transform_8, window_bounds = array<i64: 1, 128>}, {pipeline_mode = #tpu.pipeline_mode<synchronous>, transform_indices = @transform_9, window_bounds = array<i64: 384, 128>}, {pipeline_mode = #tpu.pipeline_mode<synchronous>, transform_indices = @transform_10, window_bounds = array<i64: 1, 128>}, {pipeline_mode = #tpu.pipeline_mode<synchronous>, transform_indices = @transform_11, window_bounds = array<i64: 128, 128>}, {pipeline_mode = #tpu.pipeline_mode<synchronous>, transform_indices = @transform_12, window_bounds = array<i64: 1, 128>}, {transform_indices = @transform_13, window_bounds = array<i64: 1, 1, 128>}]} {
    %cst = arith.constant 0.000000e+00 : f32
    %0 = vector.broadcast %cst : f32 to vector<1x8x128xf32>
    %c0 = arith.constant 0 : index
    %c0_0 = arith.constant 0 : index
    %c0_1 = arith.constant 0 : index
    %1 = vector.load %arg15[%c0, %c0_0, %c0_1] : memref<1x24x128xf32, #tpu.memory_space<vmem>>, vector<1x8x128xf32>
    tpu.vector_store %arg15[%c0, %c0_0, %c0_1], %0 {strides = array<i32>} : memref<1x24x128xf32, #tpu.memory_space<vmem>>, vector<1x8x128xf32>,
    %c0_2 = arith.constant 0 : index
    %c0_3 = arith.constant 0 : index
    %c0_4 = arith.constant 0 : index
    %2 = vector.load %arg1[%c0_2, %c0_3, %c0_4] : memref<1x16x128xf32, #tpu.memory_space<vmem>>, vector<1x16x128xf32>
    %c0_5 = arith.constant 0 : index
    %c8 = arith.constant 8 : index
    %c0_6 = arith.constant 0 : index
    %3 = vector.load %arg15[%c0_5, %c8, %c0_6] : memref<1x24x128xf32, #tpu.memory_space<vmem>>, vector<1x16x128xf32>
    tpu.vector_store %arg15[%c0_5, %c8, %c0_6], %2 {strides = array<i32>} : memref<1x24x128xf32, #tpu.memory_space<vmem>>, vector<1x16x128xf32>,
    %c0_7 = arith.constant 0 : index
    %c6 = arith.constant 6 : index
    %c0_8 = arith.constant 0 : index
    %4 = vector.load %arg15[%c0_7, %c6, %c0_8] : memref<1x24x128xf32, #tpu.memory_space<vmem>>, vector<1x16x128xf32>
    %c0_9 = arith.constant 0 : index
    %c7 = arith.constant 7 : index
    %c0_10 = arith.constant 0 : index
    %5 = vector.load %arg15[%c0_9, %c7, %c0_10] : memref<1x24x128xf32, #tpu.memory_space<vmem>>, vector<1x16x128xf32>
    %c0_11 = arith.constant 0 : index
    %c8_12 = arith.constant 8 : index
    %c0_13 = arith.constant 0 : index
    %6 = vector.load %arg15[%c0_11, %c8_12, %c0_13] : memref<1x24x128xf32, #tpu.memory_space<vmem>>, vector<1x16x128xf32>
    %7 = tpu.concatenate %4, %5, %6 in 2 : vector<1x16x128xf32>, vector<1x16x128xf32>, vector<1x16x128xf32> -> vector<1x16x384xf32>
    %8 = vector.shape_cast %7 : vector<1x16x384xf32> to vector<16x384xf32>
    %9 = arith.truncf %8 : vector<16x384xf32> to vector<16x384xbf16>
    %c0_14 = arith.constant 0 : index
    %c0_15 = arith.constant 0 : index
    %10 = vector.load %arg2[%c0_14, %c0_15] : memref<384x128xbf16, #tpu.memory_space<vmem>>, vector<384x128xbf16>
    %cst_16 = arith.constant dense<0.000000e+00> : vector<16x128xf32>
    %11 = tpu.matmul %9, %10, %cst_16 {dimension_numbers = #tpu.dot_dimension_numbers<[1], [0], [0], [1], [0, 0, 1, 1], [], []>} : vector<16x384xbf16>, vector<384x128xbf16>, vector<16x128xf32> -> vector<16x128xf32>
    %c0_17 = arith.constant 0 : index
    %c0_18 = arith.constant 0 : index
    %12 = vector.load %arg3[%c0_17, %c0_18] : memref<1x128xf32, #tpu.memory_space<vmem>>, vector<1x128xf32>
    %13 = vector.broadcast %12 : vector<1x128xf32> to vector<16x128xf32>
    %14 = arith.addf %11, %13 : vector<16x128xf32>
    %15 = vector.shape_cast %14 : vector<16x128xf32> to vector<1x16x128xf32>
    %cst_19 = arith.constant 0.000000e+00 : f32
    %16 = vector.broadcast %cst_19 : f32 to vector<1x16x128xf32>
    %17 = arith.maximumf %15, %16 : vector<1x16x128xf32>
    %c0_20 = arith.constant 0 : index
    %c8_21 = arith.constant 8 : index
    %c0_22 = arith.constant 0 : index
    %18 = vector.load %arg15[%c0_20, %c8_21, %c0_22] : memref<1x24x128xf32, #tpu.memory_space<vmem>>, vector<1x16x128xf32>
    tpu.vector_store %arg15[%c0_20, %c8_21, %c0_22], %17 {strides = array<i32>} : memref<1x24x128xf32, #tpu.memory_space<vmem>>, vector<1x16x128xf32>,
    %c0_23 = arith.constant 0 : index
    %c6_24 = arith.constant 6 : index
    %c0_25 = arith.constant 0 : index
    %19 = vector.load %arg15[%c0_23, %c6_24, %c0_25] : memref<1x24x128xf32, #tpu.memory_space<vmem>>, vector<1x16x128xf32>
    %c0_26 = arith.constant 0 : index
    %c7_27 = arith.constant 7 : index
    %c0_28 = arith.constant 0 : index
    %20 = vector.load %arg15[%c0_26, %c7_27, %c0_28] : memref<1x24x128xf32, #tpu.memory_space<vmem>>, vector<1x16x128xf32>
    %c0_29 = arith.constant 0 : index
    %c8_30 = arith.constant 8 : index
    %c0_31 = arith.constant 0 : index
    %21 = vector.load %arg15[%c0_29, %c8_30, %c0_31] : memref<1x24x128xf32, #tpu.memory_space<vmem>>, vector<1x16x128xf32>
    %22 = tpu.concatenate %19, %20, %21 in 2 : vector<1x16x128xf32>, vector<1x16x128xf32>, vector<1x16x128xf32> -> vector<1x16x384xf32>
    %23 = vector.shape_cast %22 : vector<1x16x384xf32> to vector<16x384xf32>
    %24 = arith.truncf %23 : vector<16x384xf32> to vector<16x384xbf16>
    %c0_32 = arith.constant 0 : index
    %c0_33 = arith.constant 0 : index
    %25 = vector.load %arg4[%c0_32, %c0_33] : memref<384x128xbf16, #tpu.memory_space<vmem>>, vector<384x128xbf16>
    %cst_34 = arith.constant dense<0.000000e+00> : vector<16x128xf32>
    %26 = tpu.matmul %24, %25, %cst_34 {dimension_numbers = #tpu.dot_dimension_numbers<[1], [0], [0], [1], [0, 0, 1, 1], [], []>} : vector<16x384xbf16>, vector<384x128xbf16>, vector<16x128xf32> -> vector<16x128xf32>
    %c0_35 = arith.constant 0 : index
    %c0_36 = arith.constant 0 : index
    %27 = vector.load %arg5[%c0_35, %c0_36] : memref<1x128xf32, #tpu.memory_space<vmem>>, vector<1x128xf32>
    %28 = vector.broadcast %27 : vector<1x128xf32> to vector<16x128xf32>
    %29 = arith.addf %26, %28 : vector<16x128xf32>
    %30 = vector.shape_cast %29 : vector<16x128xf32> to vector<1x16x128xf32>
    %cst_37 = arith.constant 0.000000e+00 : f32
    %31 = vector.broadcast %cst_37 : f32 to vector<1x16x128xf32>
    %32 = arith.maximumf %30, %31 : vector<1x16x128xf32>
    %33 = vector.shape_cast %2 : vector<1x16x128xf32> to vector<16x128xf32>
    %34 = arith.truncf %33 : vector<16x128xf32> to vector<16x128xbf16>
    %c0_38 = arith.constant 0 : index
    %c0_39 = arith.constant 0 : index
    %35 = vector.load %arg6[%c0_38, %c0_39] : memref<128x128xbf16, #tpu.memory_space<vmem>>, vector<128x128xbf16>
    %cst_40 = arith.constant dense<0.000000e+00> : vector<16x128xf32>
    %36 = tpu.matmul %34, %35, %cst_40 {dimension_numbers = #tpu.dot_dimension_numbers<[1], [0], [0], [1], [0, 0, 1, 1], [], []>} : vector<16x128xbf16>, vector<128x128xbf16>, vector<16x128xf32> -> vector<16x128xf32>
    %37 = vector.shape_cast %36 : vector<16x128xf32> to vector<1x16x128xf32>
    %c0_41 = arith.constant 0 : index
    %c0_42 = arith.constant 0 : index
    %38 = vector.load %arg7[%c0_41, %c0_42] : memref<1x128xf32, #tpu.memory_space<vmem>>, vector<1x128xf32>
    %39 = vector.shape_cast %38 : vector<1x128xf32> to vector<1x1x128xf32>
    %40 = vector.broadcast %39 : vector<1x1x128xf32> to vector<1x16x128xf32>
    %41 = arith.addf %37, %40 : vector<1x16x128xf32>
    %42 = arith.addf %32, %41 : vector<1x16x128xf32>
    %cst_43 = arith.constant 0.000000e+00 : f32
    %43 = vector.broadcast %cst_43 : f32 to vector<1x16x128xf32>
    %44 = arith.maximumf %42, %43 : vector<1x16x128xf32>
    %c0_44 = arith.constant 0 : index
    %c8_45 = arith.constant 8 : index
    %c0_46 = arith.constant 0 : index
    %45 = vector.load %arg15[%c0_44, %c8_45, %c0_46] : memref<1x24x128xf32, #tpu.memory_space<vmem>>, vector<1x16x128xf32>
    tpu.vector_store %arg15[%c0_44, %c8_45, %c0_46], %44 {strides = array<i32>} : memref<1x24x128xf32, #tpu.memory_space<vmem>>, vector<1x16x128xf32>,
    %c0_47 = arith.constant 0 : index
    %c4 = arith.constant 4 : index
    %c0_48 = arith.constant 0 : index
    %46 = vector.load %arg15[%c0_47, %c4, %c0_48] : memref<1x24x128xf32, #tpu.memory_space<vmem>>, vector<1x16x128xf32>
    %c0_49 = arith.constant 0 : index
    %c6_50 = arith.constant 6 : index
    %c0_51 = arith.constant 0 : index
    %47 = vector.load %arg15[%c0_49, %c6_50, %c0_51] : memref<1x24x128xf32, #tpu.memory_space<vmem>>, vector<1x16x128xf32>
    %c0_52 = arith.constant 0 : index
    %c8_53 = arith.constant 8 : index
    %c0_54 = arith.constant 0 : index
    %48 = vector.load %arg15[%c0_52, %c8_53, %c0_54] : memref<1x24x128xf32, #tpu.memory_space<vmem>>, vector<1x16x128xf32>
    %49 = tpu.concatenate %46, %47, %48 in 2 : vector<1x16x128xf32>, vector<1x16x128xf32>, vector<1x16x128xf32> -> vector<1x16x384xf32>
    %50 = vector.shape_cast %49 : vector<1x16x384xf32> to vector<16x384xf32>
    %51 = arith.truncf %50 : vector<16x384xf32> to vector<16x384xbf16>
    %c0_55 = arith.constant 0 : index
    %c0_56 = arith.constant 0 : index
    %52 = vector.load %arg8[%c0_55, %c0_56] : memref<384x128xbf16, #tpu.memory_space<vmem>>, vector<384x128xbf16>
    %cst_57 = arith.constant dense<0.000000e+00> : vector<16x128xf32>
    %53 = tpu.matmul %51, %52, %cst_57 {dimension_numbers = #tpu.dot_dimension_numbers<[1], [0], [0], [1], [0, 0, 1, 1], [], []>} : vector<16x384xbf16>, vector<384x128xbf16>, vector<16x128xf32> -> vector<16x128xf32>
    %c0_58 = arith.constant 0 : index
    %c0_59 = arith.constant 0 : index
    %54 = vector.load %arg9[%c0_58, %c0_59] : memref<1x128xf32, #tpu.memory_space<vmem>>, vector<1x128xf32>
    %55 = vector.broadcast %54 : vector<1x128xf32> to vector<16x128xf32>
    %56 = arith.addf %53, %55 : vector<16x128xf32>
    %57 = vector.shape_cast %56 : vector<16x128xf32> to vector<1x16x128xf32>
    %cst_60 = arith.constant 0.000000e+00 : f32
    %58 = vector.broadcast %cst_60 : f32 to vector<1x16x128xf32>
    %59 = arith.maximumf %57, %58 : vector<1x16x128xf32>
    %c0_61 = arith.constant 0 : index
    %c8_62 = arith.constant 8 : index
    %c0_63 = arith.constant 0 : index
    %60 = vector.load %arg15[%c0_61, %c8_62, %c0_63] : memref<1x24x128xf32, #tpu.memory_space<vmem>>, vector<1x16x128xf32>
    tpu.vector_store %arg15[%c0_61, %c8_62, %c0_63], %59 {strides = array<i32>} : memref<1x24x128xf32, #tpu.memory_space<vmem>>, vector<1x16x128xf32>,
    %c0_64 = arith.constant 0 : index
    %c4_65 = arith.constant 4 : index
    %c0_66 = arith.constant 0 : index
    %61 = vector.load %arg15[%c0_64, %c4_65, %c0_66] : memref<1x24x128xf32, #tpu.memory_space<vmem>>, vector<1x16x128xf32>
    %c0_67 = arith.constant 0 : index
    %c6_68 = arith.constant 6 : index
    %c0_69 = arith.constant 0 : index
    %62 = vector.load %arg15[%c0_67, %c6_68, %c0_69] : memref<1x24x128xf32, #tpu.memory_space<vmem>>, vector<1x16x128xf32>
    %c0_70 = arith.constant 0 : index
    %c8_71 = arith.constant 8 : index
    %c0_72 = arith.constant 0 : index
    %63 = vector.load %arg15[%c0_70, %c8_71, %c0_72] : memref<1x24x128xf32, #tpu.memory_space<vmem>>, vector<1x16x128xf32>
    %64 = tpu.concatenate %61, %62, %63 in 2 : vector<1x16x128xf32>, vector<1x16x128xf32>, vector<1x16x128xf32> -> vector<1x16x384xf32>
    %65 = vector.shape_cast %64 : vector<1x16x384xf32> to vector<16x384xf32>
    %66 = arith.truncf %65 : vector<16x384xf32> to vector<16x384xbf16>
    %c0_73 = arith.constant 0 : index
    %c0_74 = arith.constant 0 : index
    %67 = vector.load %arg10[%c0_73, %c0_74] : memref<384x128xbf16, #tpu.memory_space<vmem>>, vector<384x128xbf16>
    %cst_75 = arith.constant dense<0.000000e+00> : vector<16x128xf32>
    %68 = tpu.matmul %66, %67, %cst_75 {dimension_numbers = #tpu.dot_dimension_numbers<[1], [0], [0], [1], [0, 0, 1, 1], [], []>} : vector<16x384xbf16>, vector<384x128xbf16>, vector<16x128xf32> -> vector<16x128xf32>
    %c0_76 = arith.constant 0 : index
    %c0_77 = arith.constant 0 : index
    %69 = vector.load %arg11[%c0_76, %c0_77] : memref<1x128xf32, #tpu.memory_space<vmem>>, vector<1x128xf32>
    %70 = vector.broadcast %69 : vector<1x128xf32> to vector<16x128xf32>
    %71 = arith.addf %68, %70 : vector<16x128xf32>
    %72 = vector.shape_cast %71 : vector<16x128xf32> to vector<1x16x128xf32>
    %cst_78 = arith.constant 0.000000e+00 : f32
    %73 = vector.broadcast %cst_78 : f32 to vector<1x16x128xf32>
    %74 = arith.maximumf %72, %73 : vector<1x16x128xf32>
    %75 = arith.addf %74, %44 : vector<1x16x128xf32>
    %cst_79 = arith.constant 0.000000e+00 : f32
    %76 = vector.broadcast %cst_79 : f32 to vector<1x16x128xf32>
    %77 = arith.maximumf %75, %76 : vector<1x16x128xf32>
    %78 = vector.extract_strided_slice %77 {offsets = [0, 15, 0], sizes = [1, 1, 128], strides = [1, 1, 1]} : vector<1x16x128xf32> to vector<1x1x128xf32>
    %79 = vector.shape_cast %78 : vector<1x1x128xf32> to vector<1x128xf32>
    %80 = arith.truncf %79 : vector<1x128xf32> to vector<1x128xbf16>
    %c0_80 = arith.constant 0 : index
    %c0_81 = arith.constant 0 : index
    %81 = vector.load %arg12[%c0_80, %c0_81] : memref<128x128xbf16, #tpu.memory_space<vmem>>, vector<128x128xbf16>
    %cst_82 = arith.constant dense<0.000000e+00> : vector<1x128xf32>
    %82 = tpu.matmul %80, %81, %cst_82 {dimension_numbers = #tpu.dot_dimension_numbers<[1], [0], [0], [1], [0, 0, 1, 1], [], []>} : vector<1x128xbf16>, vector<128x128xbf16>, vector<1x128xf32> -> vector<1x128xf32>
    %c0_83 = arith.constant 0 : index
    %c0_84 = arith.constant 0 : index
    %83 = vector.load %arg13[%c0_83, %c0_84] : memref<1x128xf32, #tpu.memory_space<vmem>>, vector<1x128xf32>
    %84 = arith.addf %82, %83 : vector<1x128xf32>
    %c0_85 = arith.constant 0 : index
    %c0_86 = arith.constant 0 : index
    %c0_87 = arith.constant 0 : index
    %85 = vector.load %arg14[%c0_85, %c0_86, %c0_87] : memref<1x1x128xf32, #tpu.memory_space<vmem>>, vector<1x1x128xf32>
    %86 = vector.shape_cast %85 : vector<1x1x128xf32> to vector<1x128xf32>
    %87 = vector.shape_cast %84 : vector<1x128xf32> to vector<1x1x128xf32>
    tpu.vector_store %arg14[%c0_85, %c0_86, %c0_87], %87 {strides = array<i32>} : memref<1x1x128xf32, #tpu.memory_space<vmem>>, vector<1x1x128xf32>,
    return
  }
  func.func @transform_0(%arg0: i32) -> (i32, i32, i32) {
    %c0_i32 = arith.constant 0 : i32
    %c0_i32_0 = arith.constant 0 : i32
    %c0_i32_1 = arith.constant 0 : i32
    return %arg0, %c0_i32, %c0_i32_0 : i32, i32, i32
  }
  func.func @transform_1(%arg0: i32) -> (i32, i32) {
    %c0_i32 = arith.constant 0 : i32
    %c0_i32_0 = arith.constant 0 : i32
    %c0_i32_1 = arith.constant 0 : i32
    return %c0_i32, %c0_i32_0 : i32, i32
  }
  func.func @transform_2(%arg0: i32) -> (i32, i32) {
    %c0_i32 = arith.constant 0 : i32
    %c0_i32_0 = arith.constant 0 : i32
    %c0_i32_1 = arith.constant 0 : i32
    return %c0_i32, %c0_i32_0 : i32, i32
  }
  func.func @transform_3(%arg0: i32) -> (i32, i32) {
    %c0_i32 = arith.constant 0 : i32
    %c0_i32_0 = arith.constant 0 : i32
    %c0_i32_1 = arith.constant 0 : i32
    return %c0_i32, %c0_i32_0 : i32, i32
  }
  func.func @transform_4(%arg0: i32) -> (i32, i32) {
    %c0_i32 = arith.constant 0 : i32
    %c0_i32_0 = arith.constant 0 : i32
    %c0_i32_1 = arith.constant 0 : i32
    return %c0_i32, %c0_i32_0 : i32, i32
  }
  func.func @transform_5(%arg0: i32) -> (i32, i32) {
    %c0_i32 = arith.constant 0 : i32
    %c0_i32_0 = arith.constant 0 : i32
    %c0_i32_1 = arith.constant 0 : i32
    return %c0_i32, %c0_i32_0 : i32, i32
  }
  func.func @transform_6(%arg0: i32) -> (i32, i32) {
    %c0_i32 = arith.constant 0 : i32
    %c0_i32_0 = arith.constant 0 : i32
    %c0_i32_1 = arith.constant 0 : i32
    return %c0_i32, %c0_i32_0 : i32, i32
  }
  func.func @transform_7(%arg0: i32) -> (i32, i32) {
    %c0_i32 = arith.constant 0 : i32
    %c0_i32_0 = arith.constant 0 : i32
    %c0_i32_1 = arith.constant 0 : i32
    return %c0_i32, %c0_i32_0 : i32, i32
  }
  func.func @transform_8(%arg0: i32) -> (i32, i32) {
    %c0_i32 = arith.constant 0 : i32
    %c0_i32_0 = arith.constant 0 : i32
    %c0_i32_1 = arith.constant 0 : i32
    return %c0_i32, %c0_i32_0 : i32, i32
  }
  func.func @transform_9(%arg0: i32) -> (i32, i32) {
    %c0_i32 = arith.constant 0 : i32
    %c0_i32_0 = arith.constant 0 : i32
    %c0_i32_1 = arith.constant 0 : i32
    return %c0_i32, %c0_i32_0 : i32, i32
  }
  func.func @transform_10(%arg0: i32) -> (i32, i32) {
    %c0_i32 = arith.constant 0 : i32
    %c0_i32_0 = arith.constant 0 : i32
    %c0_i32_1 = arith.constant 0 : i32
    return %c0_i32, %c0_i32_0 : i32, i32
  }
  func.func @transform_11(%arg0: i32) -> (i32, i32) {
    %c0_i32 = arith.constant 0 : i32
    %c0_i32_0 = arith.constant 0 : i32
    %c0_i32_1 = arith.constant 0 : i32
    return %c0_i32, %c0_i32_0 : i32, i32
  }
  func.func @transform_12(%arg0: i32) -> (i32, i32) {
    %c0_i32 = arith.constant 0 : i32
    %c0_i32_0 = arith.constant 0 : i32
    %c0_i32_1 = arith.constant 0 : i32
    return %c0_i32, %c0_i32_0 : i32, i32
  }
  func.func @transform_13(%arg0: i32) -> (i32, i32, i32) {
    %c0_i32 = arith.constant 0 : i32
    %c0_i32_0 = arith.constant 0 : i32
    %c0_i32_1 = arith.constant 0 : i32
    return %arg0, %c0_i32, %c0_i32_0 : i32, i32, i32
  }
}

</mosaic_0001>

<bundles_post_ra>
// kernel: _lambda_.1
= control target key start
LH: loop header
LB: loop body
LE: loop exit
PB: predicated region body
PF: predicated region fallthrough
CT: control target
= control target key end

     0   :  { %s3225_s0 = inlined_call_operand.vmem [shape: f32[2,16,128], index: 0, kind: input, shape index: {}]   ;;  %s3226_s1 = inlined_call_operand.hbm [shape: bf16[384,128], index: 1, kind: input, shape index: {}]   ;;  %s3227_s2 = inlined_call_operand.vmem [shape: f32[1,128], index: 2, kind: input, shape index: {}]   ;;  %s3228_s3 = inlined_call_operand.hbm [shape: bf16[384,128], index: 3, kind: input, shape index: {}]   ;;  %s3229_s4 = inlined_call_operand.vmem [shape: f32[1,128], index: 4, kind: input, shape index: {}]   ;;  %s3230_s5 = inlined_call_operand.hbm [shape: bf16[128,128], index: 5, kind: input, shape index: {}]   ;;  %s3231_s6 = inlined_call_operand.vmem [shape: f32[1,128], index: 6, kind: input, shape index: {}]   ;;  %s3232_s7 = inlined_call_operand.hbm [shape: bf16[384,128], index: 7, kind: input, shape index: {}]   ;;  %s3233_s8 = inlined_call_operand.vmem [shape: f32[1,128], index: 8, kind: input, shape index: {}]   ;;  %s3234_s9 = inlined_call_operand.hbm [shape: bf16[384,128], index: 9, kind: input, shape index: {}]   ;;  %s3235_s10 = inlined_call_operand.vmem [shape: f32[1,128], index: 10, kind: input, shape index: {}]   ;;  %s3236_s11 = inlined_call_operand.vmem [shape: bf16[128,128], index: 11, kind: input, shape index: {}]   ;;  %s3237_s12 = inlined_call_operand.vmem [shape: f32[1,128], index: 12, kind: input, shape index: {}]   ;;  %s3238_s13 = inlined_call_operand.hbm [shape: f32[2,1,128], index: 13, kind: output, shape index: {}]  }
   0x1   :  { %3245 = sst [smem:[#allocation22_spill]] %s3228_s3 }
   0x2   :  { %18 = vsyncpa [#allocation4], 0 }
   0x3   :  { %19 = vsyncpa [#allocation7], 0 }
   0x4   :  { %20 = vsyncpa [#allocation10], 0 }
   0x5   :  { %21 = vsyncpa [#allocation5], 0 }
   0x6   :  { %23 = vsyncpa [#allocation5 + $0x1], 0  ;;  %s2929_s25 = smov 0   ;;  %s2931_s26 = smov 0  }
   0x7   :  { %s2933_s27 = smov 0   ;;  %s2935_s28 = smov 0  }
   0x8 LB: > { %3246 = sst [smem:[#allocation17_spill]] %s2835_s25  ;;  %s2950_s29 = sadd.s32 4294967295, %s2847_s28   ;;  %s2847_s28 = sphi %s2935_s28, %s3265_s28   ;;  %s2843_s27 = sphi %s2933_s27, %s3267_s27   ;;  %s2839_s26 = sphi %s2931_s26, %s3269_s26   ;;  %s2835_s25 = sphi %s2929_s25, %s3268_s25  }
   0x9   : > { %3247 = sst [smem:[#allocation18_spill]] %s2843_s27  ;;  %s2039_s30 = sadd.s32 4294967294, %s2847_s28  }
   0xa   : > { %s2954_s14 = sadd.s32 1, %s2847_s28   ;;  %s314_s15 = sadd.s32 1, %s2843_s27 }
   0xb   : > { %3248 = sst [smem:[#allocation19_spill]] %s2954_s14  ;;  %s311_s16 = ssub.s32 %s2847_s28, %s2954_s14 }
   0xc   : > { %p324_p0 = scmp.ne.s32.totalorder %s2843_s27, %s2839_s26  ;;  %p312_p1 = scmp.eq.s32.totalorder %s311_s16, 0 }
   0xd   : > { %p325_p2 = scmp.eq.s32.totalorder %s2950_s29, 1  ;;  %p330_p3 = scmp.ne.s32.totalorder %s2839_s26, %s2835_s25 }
   0xe   : > { %p331_p4 = scmp.eq.s32.totalorder %s2039_s30, 1  ;;  %p2040_p7 = scmp.ge.s32.totalorder %s2847_s28, 1 }
   0xf   : > { %s2965_s17 = scalar_select %p312_p1, %s2843_s27, %s314_s15  }
  0x10   : > { %p2967_p5 = por %p325_p2, %p324_p0  ;;  %p2971_p6 = por %p331_p4, %p330_p3 }
  0x11   : > { %3249 = sst [smem:[#allocation20_spill]] %s2965_s17  ;;  %p338_p8 = scmp.lt.s32.totalorder %s2847_s28, 3 }
  0x12   : > { %s3251_s19 = scalar_select %p2971_p6, 1, 0 }
  0x13   : > { %p3244_p9 = scmp.eq.s32.totalorder %s2950_s29, 0  ;;  %p2978_p10 = pnand %p2040_p7, %p338_p8 }
  0x14   : > { %3252 = sst [smem:[#allocation21_spill]] %s3251_s19  ;;  %s2849_s21 = smov [#allocation6]  }
  0x15   : > { %p2460_p11 = pneg %p2978_p10  ;;  %s366_s22 = sshll.u32 %s2849_s21, 4  ;;  %s367_s22 = int_to_ptr.vmem [resolvable:$true] %s366_s22 }
  0x16   : > { %s2850_s24 = smov [#allocation9]   ;;  %s2851_s15 = smov [#allocation3]  }
  0x17   : > { %p2986_p12 = pnand %p3244_p9, %p2460_p11  ;;  %s398_s30 = sshll.u32 %s2850_s24, 4  ;;  %s399_s30 = int_to_ptr.vmem [resolvable:$true] %s398_s30 }
  0x18   : > { %s350_s16 = sshll.u32 %s2851_s15, 4  ;;  %s2656_s27 = scalar_lea.vmem %s367_s22, 3072  ;;  %s351_s16 = int_to_ptr.vmem [resolvable:$true] %s350_s16 }
  0x19   : > { %p2992_p13 = pneg %p2986_p12  ;;  %p2657_p0 = scmp.ne.s32.totalorder %s367_s22, %s2656_s27 }
  0x1a   : > { %p2664_p3 = scmp.lt.s32.totalorder %s367_s22, %s367_s22  ;;  %p2665_p4 = scmp.lt.s32.totalorder %s2656_s27, %s2656_s27 }
  0x1b   : > { %p2659_p1 = pnand %p2657_p0, %p2992_p13 }
  0x1c   : > { %p2666_p7 = por %p2665_p4, %p2664_p3 }
  0x1d   : > { %p2660_p2 = pneg %p2659_p1 }
  0x1f   : > { %p2667_p8 = pnand %p2666_p7, %p2660_p2 }
  0x21   : > { %2670 = shalt.err (!%p2667_p8)
}
  0x22   : > { %s2852_s21 = smov 64   ;;  %s2853_s24 = smov 4  }
  0x23   : > { %s3256_s3 = sld [smem:[#allocation22_spill]]  ;;  %s2682_s19 = scalar_lea.vmem %s399_s30, 3072 }
  0x24   : > { %p2683_p11 = scmp.ne.s32.totalorder %s399_s30, %s2682_s19  ;;  %p2690_p3 = scmp.lt.s32.totalorder %s399_s30, %s399_s30 }
  0x25   : > { %p2691_p2 = scmp.lt.s32.totalorder %s2682_s19, %s2682_s19 }
  0x26   : > { %p2685_p0 = pnand %p2683_p11, %p2992_p13 }
  0x27   : > { %p2692_p4 = por %p2691_p2, %p2690_p3 }
  0x28   : > { %p2686_p1 = pneg %p2685_p0 }
  0x29   : > { %2466 = dma.hbm_to_vmem [thread:$0]  (!%p2986_p12), %s3256_s3, 3072, %s367_s22, [#allocation7], %s2852_s21, %s2852_s21, %s2853_s24  }
  0x2a   : > { %p2693_p7 = pnand %p2692_p4, %p2686_p1 }
  0x2c   : > { %2696 = shalt.err (!%p2693_p7)
}
  0x2d   : > { %2472 = dma.hbm_to_vmem [thread:$0]  (!%p2986_p12), %s3232_s7, 3072, %s399_s30, [#allocation10], %s2852_s21, %s2852_s21, %s2853_s24  }
  0x2e   : > { %s2708_s14 = scalar_lea.vmem %s351_s16, 3072  ;;  %p2716_p9 = scmp.lt.s32.totalorder %s351_s16, %s351_s16 }
  0x2f   : > { %p2709_p8 = scmp.ne.s32.totalorder %s351_s16, %s2708_s14  ;;  %p2717_p3 = scmp.lt.s32.totalorder %s2708_s14, %s2708_s14 }
  0x31   : > { %p2711_p11 = pnand %p2709_p8, %p2992_p13  ;;  %p2718_p1 = por %p2717_p3, %p2716_p9 }
  0x33   : > { %p2712_p0 = pneg %p2711_p11 }
  0x35   : > { %p2719_p2 = pnand %p2718_p1, %p2712_p0 }
  0x37   : > { %2722 = shalt.err (!%p2719_p2)
}
  0x38   : > { %2463 = dma.hbm_to_vmem [thread:$0]  (!%p2986_p12), %s3226_s1, 3072, %s351_s16, [#allocation4], %s2852_s21, %s2852_s21, %s2853_s24  }
  0x39   : > { %s2854_s22 = smov [#allocation8]   ;;  %s2855_s15 = smov [#allocation11]  }
  0x3a   : > { %s382_s30 = sshll.u32 %s2854_s22, 4  ;;  %s414_s27 = sshll.u32 %s2855_s15, 4  ;;  %s383_s30 = int_to_ptr.vmem [resolvable:$true] %s382_s30  ;;  %s415_s27 = int_to_ptr.vmem [resolvable:$true] %s414_s27 }
  0x3b   : > { %s2734_s3 = scalar_lea.vmem %s383_s30, 1024  ;;  %p2742_p8 = scmp.lt.s32.totalorder %s383_s30, %s383_s30 }
  0x3c   : > { %p2735_p4 = scmp.ne.s32.totalorder %s383_s30, %s2734_s3  ;;  %p2743_p11 = scmp.lt.s32.totalorder %s2734_s3, %s2734_s3 }
  0x3e   : > { %p2737_p9 = pnand %p2735_p4, %p2992_p13  ;;  %p2744_p0 = por %p2743_p11, %p2742_p8 }
  0x40   : > { %p2738_p7 = pneg %p2737_p9 }
  0x42   : > { %p2745_p3 = pnand %p2744_p0, %p2738_p7 }
  0x44   : > { %2748 = shalt.err (!%p2745_p3)
}
  0x45   : > { %2469 = dma.hbm_to_vmem [thread:$0]  (!%p2986_p12), %s3230_s5, 1024, %s383_s30, [#allocation7], %s2852_s21, %s2852_s21, %s2853_s24  }
  0x46   : > { %s2760_s19 = scalar_lea.vmem %s415_s27, 3072  ;;  %p2768_p9 = scmp.lt.s32.totalorder %s415_s27, %s415_s27 }
  0x47   : > { %p2761_p1 = scmp.ne.s32.totalorder %s415_s27, %s2760_s19  ;;  %p2769_p8 = scmp.lt.s32.totalorder %s2760_s19, %s2760_s19 }
  0x49   : > { %p2763_p2 = pnand %p2761_p1, %p2992_p13  ;;  %p2770_p7 = por %p2769_p8, %p2768_p9 }
  0x4b   : > { %p2764_p4 = pneg %p2763_p2 }
  0x4d   : > { %p2771_p11 = pnand %p2770_p7, %p2764_p4 }
  0x4f   : > { %2774 = shalt.err (!%p2771_p11)
}
  0x50   : > { %2475 = dma.hbm_to_vmem [thread:$0]  (!%p2986_p12), %s3234_s9, 3072, %s415_s27, [#allocation10], %s2852_s21, %s2852_s21, %s2853_s24  }
  0x51   : > { %447 = sbr.rel (%p2978_p10) target bundleno = 1236 (0x4d4), region = 72  ;;  %p3257_p13 = scmp.eq.s32.totalorder (!%p2978_p10), %s2950_s29, 0 }
  0x56   : > { %2818 = dma.done.wait (%p3257_p13), [#allocation4], 3072   ;;  %p3258_p0 = pmov %p3257_p13 }
  0x58   : > { %2820 = vsyncadd (%p3258_p0), [#allocation4], 4294964224  ;;  %p3259_p3 = pmov %p3258_p0 }
  0x59   : > { %p3260_p1 = pmov %p3258_p0 }
  0x5a   : > { %2822 = dma.done.wait (%p3259_p3), [#allocation7], 4096  }
  0x5b   : > { %2824 = vsyncadd (%p3260_p1), [#allocation7], 4294963200  ;;  %p3261_p2 = pmov %p3258_p0 }
  0x5c   : > { %p3262_p12 = pmov %p3258_p0 }
  0x5d   : > { %2826 = dma.done.wait (%p3261_p2), [#allocation10], 6144  }
  0x5e   : > { %2828 = vsyncadd (%p3262_p12), [#allocation10], 4294961152  ;;  %v2856_v0 = vmov 0.0   ;;  %vm2857_vm0 = vmmov 0   ;;  %v2532_v1 = vld [vmem:[#allocation3 + $0x78] sm:$0xff]   ;;  %v2535_v4 = vld [vmem:[#allocation3 + $0x70] sm:$0xff]  }
  0x5f   : > { %2318 = vmatprep.subr.bf16.mxu1 %v2856_v0  ;;  %512 = vst [vmem:[#allocation2] sm:$0xff] %v2856_v0  ;;  %2334 = vmatprep.mubr.msk.bf16.mxu1 %vm2857_vm0, %v2856_v0  ;;  %v2533_v2 = vld [vmem:[#allocation3 + $0x38] sm:$0xff]   ;;  %v2536_v5 = vld [vmem:[#allocation3 + $0x30] sm:$0xff]   ;;  %v2538_v7 = vld [vmem:[#allocation3 + $0x68] sm:$0xff]   ;;  %p506_p10 = scmp.lt.s32.totalorder %s2950_s29, 1  ;;  %s504_s21 = sand.u32 1, %s2839_s26  }
  0x60   : > { %2176 = vmatprep.subr.bf16.mxu0 %v2532_v1  ;;  %v2534_v3 = vld [vmem:[#allocation3 + $0xb8] sm:$0xff]   ;;  %v2537_v6 = vld [vmem:[#allocation3 + $0xb0] sm:$0xff]   ;;  %v2539_v8 = vld [vmem:[#allocation3 + $0x28] sm:$0xff]   ;;  %s2172_s30 = sshll.u32 %s2950_s29, 4  ;;  %s505_s15 = scalar_lea.vmem [#allocation12], %s504_s21 }
  0x61   : > { %2177 = vmatpush3.bf16.msra.mxu0 %v2533_v2  ;;  %2319 = vmatpush3.bf16.msra.mxu1 %v2534_v3  ;;  %v2540_v9 = vld [vmem:[#allocation3 + $0xa8] sm:$0xff]   ;;  %v2541_v10 = vld [vmem:[#allocation3 + $0x60] sm:$0xff]   ;;  %v2544_v13 = vld [vmem:[#allocation3 + $0x58] sm:$0xff]   ;;  %s507_s17 = scalar_select %p506_p10, %s2950_s29, 1 }
  0x62   : > { %2178 = vmatprep.subr.bf16.mxu0 %v2535_v4  ;;  %2320 = vmatprep.subr.bf16.mxu1 %v2856_v0  ;;  %v2542_v11 = vld [vmem:[#allocation3 + $0x20] sm:$0xff]   ;;  %v2545_v14 = vld [vmem:[#allocation3 + $0x18] sm:$0xff]   ;;  %v2547_v16 = vld [vmem:[#allocation3 + $0x50] sm:$0xff]   ;;  %s1934_s27 = sshll.u32 %s505_s15, 4  ;;  %s3184_s19 = scalar_lea.hbm %s3238_s13, %s2172_s30  ;;  %s3186_s27 = int_to_ptr.vmem [resolvable:$true] %s1934_s27 }
  0x63   : > { %v2543_v12 = vld [vmem:[#allocation3 + $0xa0] sm:$0xff]   ;;  %v2546_v15 = vld [vmem:[#allocation3 + $0x98] sm:$0xff]   ;;  %v2548_v17 = vld [vmem:[#allocation3 + $0x10] sm:$0xff]   ;;  %s2175_s20 = sshll.u32 %s507_s17, 4  ;;  %s1922_s3 = scalar_lea.sflag [#allocation5], %s504_s21 }
  0x64   : > { %v2549_v18 = vld [vmem:[#allocation3 + $0x90] sm:$0xff]   ;;  %v2550_v19 = vld [vmem:[#allocation3 + $0x48] sm:$0xff]   ;;  %s510_s24 = scalar_lea.vmem %s3225_s0, %s2175_s20  ;;  %v2553_v22 = vld [vmem:[#allocation3 + $0x40] sm:$0xff]   ;;  %s2775_s25 = scalar_lea.vmem %s3186_s27, 16 }
  0x65   : > { %2179 = vmatpush3.bf16.msra.mxu0 %v2536_v5  ;;  %2321 = vmatpush3.bf16.msra.mxu1 %v2537_v6  ;;  %v2551_v20 = vld [vmem:[#allocation3 + $0x8] sm:$0xff]   ;;  %v514_v24 = vld [vmem:[%s510_s24 + $0x8] sm:$0xff]  ;;  %v2554_v25 = vld [vmem:[#allocation3] sm:$0xff]   ;;  %p2776_p4 = scmp.ne.s32.totalorder %s3186_s27, %s2775_s25  ;;  %s2858_s29 = smov [#allocation12]  }
  0x66   : > { %2180 = vmatprep.subr.bf16.mxu0 %v2538_v7  ;;  %2322 = vmatprep.subr.bf16.mxu1 %v2856_v0  ;;  %v2552_v21 = vld [vmem:[#allocation3 + $0x88] sm:$0xff]   ;;  %516 = vst [vmem:[#allocation2 + $0x10] sm:$0xff] %v514_v24  ;;  %v2555_v26 = vld [vmem:[#allocation3 + $0x80] sm:$0xff]   ;;  %v2556_v27 = vld [vmem:[#allocation6 + $0x78] sm:$0xff]   ;;  %s2779_s17 = sshll.u32 %s2858_s29, 4  ;;  %s2780_s17 = int_to_ptr.vmem [resolvable:$false] %s2779_s17 }
  0x67   : > { %v513_v23 = vld [vmem:[%s510_s24] sm:$0xff]  ;;  %v2558_v28 = vld [vmem:[#allocation6 + $0xb8] sm:$0xff]   ;;  %v2559_v34 = vld [vmem:[#allocation6 + $0x70] sm:$0xff]   ;;  %p2777_p9 = pnand %p2776_p4, %p2967_p5  ;;  %s2781_s20 = scalar_lea.vmem %s2780_s17, 32 }
  0x68   : > { %515 = vst [vmem:[#allocation2 + $0x8] sm:$0xff] %v513_v23  ;;  %v3076_v29 = vpack.c.bf16 %v514_v24, %v513_v23  ;;  %v2557_v30 = vld [vmem:[#allocation6 + $0x38] sm:$0xff]   ;;  %v2561_v38 = vld [vmem:[#allocation6 + $0xb0] sm:$0xff]   ;;  %v2564_v40 = vld [vmem:[#allocation6 + $0xa8] sm:$0xff]   ;;  %p2782_p7 = scmp.lt.s32.totalorder %s3186_s27, %s2780_s17  ;;  %p2783_p11 = scmp.lt.s32.totalorder %s2781_s20, %s2775_s25 }
  0x69   : > { %2181 = vmatpush3.bf16.msra.mxu0 %v2539_v8  ;;  %2323 = vmatpush3.bf16.msra.mxu1 %v2540_v9  ;;  %v2560_v39 = vld [vmem:[#allocation6 + $0x30] sm:$0xff]   ;;  %v2567_v41 = vld [vmem:[#allocation6 + $0xa0] sm:$0xff]   ;;  %v2562_v42 = vld [vmem:[#allocation6 + $0x68] sm:$0xff]   ;;  %p2778_p8 = pneg %p2777_p9 }
  0x6a   : > { %2182 = vmatprep.subr.bf16.mxu0 %v2541_v10  ;;  %2324 = vmatprep.subr.bf16.mxu1 %v2856_v0  ;;  %v2563_v43 = vld [vmem:[#allocation6 + $0x28] sm:$0xff]   ;;  %v2570_v44 = vld [vmem:[#allocation6 + $0x98] sm:$0xff]   ;;  %v2565_v45 = vld [vmem:[#allocation6 + $0x60] sm:$0xff]   ;;  %p2784_p13 = por %p2783_p11, %p2782_p7 }
  0x6b   : > { %v2566_v46 = vld [vmem:[#allocation6 + $0x20] sm:$0xff]   ;;  %v2573_v47 = vld [vmem:[#allocation6 + $0x90] sm:$0xff]   ;;  %v2568_v48 = vld [vmem:[#allocation6 + $0x58] sm:$0xff]  }
  0x6c   : > { %v2569_v49 = vld [vmem:[#allocation6 + $0x18] sm:$0xff]   ;;  %v2576_v50 = vld [vmem:[#allocation6 + $0x88] sm:$0xff]   ;;  %v2571_v51 = vld [vmem:[#allocation6 + $0x50] sm:$0xff]   ;;  %p2785_p0 = pnand %p2784_p13, %p2778_p8 }
  0x6d   : > { %2183 = vmatpush3.bf16.msra.mxu0 %v2542_v11  ;;  %2325 = vmatpush3.bf16.msra.mxu1 %v2543_v12  ;;  %v2572_v52 = vld [vmem:[#allocation6 + $0x10] sm:$0xff]   ;;  %v2579_v53 = vld [vmem:[#allocation6 + $0x80] sm:$0xff]   ;;  %v2574_v54 = vld [vmem:[#allocation6 + $0x48] sm:$0xff]  }
  0x6e   : > { %2184 = vmatprep.subr.bf16.mxu0 %v2544_v13  ;;  %2326 = vmatprep.subr.bf16.mxu1 %v2856_v0  ;;  %v2575_v55 = vld [vmem:[#allocation6 + $0x8] sm:$0xff]   ;;  %v2577_v56 = vld [vmem:[#allocation6 + $0x40] sm:$0xff]   ;;  %v2584_v23 = vld [vmem:[#allocation8 + $0x18] sm:$0xff]  }
  0x6f   : > { %v519_v31 = vld [vmem:[#allocation2 + $0x7] sm:$0xff]  ;;  %v520_v32 = vld [vmem:[#allocation2 + $0xf] sm:$0xff]  ;;  %v2578_v57 = vld [vmem:[#allocation6] sm:$0xff]  }
  0x70   : > { %v517_v33 = vld [vmem:[#allocation2 + $0x6] sm:$0xff]  ;;  %v524_v35 = vpack.c.bf16 %v520_v32, %v519_v31  ;;  %v518_v36 = vld [vmem:[#allocation2 + $0xe] sm:$0xff]  ;;  %v2055_v61 = vld [vmem:[%s3227_s2] ss:$0 sm:$0xff] }
  0x71   : > { %2185 = vmatpush3.bf16.msra.mxu0 %v2545_v14  ;;  %2327 = vmatpush3.bf16.msra.mxu1 %v2546_v15  ;;  %v523_v37 = vpack.c.bf16 %v518_v36, %v517_v33  ;;  %v2585_v24 = vld [vmem:[#allocation8 + $0x10] sm:$0xff]   ;;  %v2598_v36 = vld [vmem:[#allocation9 + $0xa0] sm:$0xff]  }
  0x72   : > { %2186 = vmatprep.subr.bf16.mxu0 %v2547_v16  ;;  %2328 = vmatprep.subr.bf16.mxu1 %v2856_v0  ;;  %v2591_v31 = vld [vmem:[#allocation9 + $0x70] sm:$0xff]  }
  0x73   : > { %757 = vmatprep.mubr.bf16.mxu0 %v524_v35  ;;  %v2592_v32 = vld [vmem:[#allocation9 + $0xb0] sm:$0xff]   ;;  %v2595_v35 = vld [vmem:[#allocation9 + $0xa8] sm:$0xff]  }
  0x74   : > { %v2593_v33 = vld [vmem:[#allocation9 + $0x30] sm:$0xff]  }
  0x75   : > { %2187 = vmatpush3.bf16.msra.mxu0 %v2548_v17  ;;  %2329 = vmatpush3.bf16.msra.mxu1 %v2549_v18 }
  0x76   : > { %2188 = vmatprep.subr.bf16.mxu0 %v2550_v19  ;;  %2330 = vmatprep.subr.bf16.mxu1 %v2856_v0  ;;  %v2580_v19 = vld [vmem:[#allocation8 + $0x38] sm:$0xff]  }
  0x79   : > { %2189 = vmatpush3.bf16.msra.mxu0 %v2551_v20  ;;  %2331 = vmatpush3.bf16.msra.mxu1 %v2552_v21  ;;  %v2581_v20 = vld [vmem:[#allocation8 + $0x30] sm:$0xff]   ;;  %v2582_v21 = vld [vmem:[#allocation8 + $0x28] sm:$0xff]  }
  0x7a   : > { %2190 = vmatprep.subr.bf16.mxu0 %v2553_v22  ;;  %2332 = vmatprep.subr.bf16.mxu1 %v2856_v0  ;;  %v2583_v22 = vld [vmem:[#allocation8 + $0x20] sm:$0xff]  }
  0x7d   : > { %2191 = vmatpush3.bf16.msra.mxu0 %v2554_v25  ;;  %2333 = vmatpush3.bf16.msra.mxu1 %v2555_v26  ;;  %v2586_v25 = vld [vmem:[#allocation8 + $0x8] sm:$0xff]   ;;  %v2587_v26 = vld [vmem:[#allocation8] sm:$0xff]  }
  0x7e   : > { %2207 = vmatprep.subr.bf16.mxu0 %v2556_v27  ;;  %2338 = vmatprep.subr.bf16.mxu1 %v2856_v0  ;;  %v2588_v27 = vld [vmem:[#allocation9 + $0x78] sm:$0xff]  }
  0x80   : > { %2335 = vmatmul.mubr.bf16.vlgmr.msra.gmra.mxu1 %v3076_v29  ;;  %758 = vmatmul.mubr.bf16.vlgmr.msra.gmra.mxu0 %v523_v37  ;;  %v2601_v37 = vld [vmem:[#allocation9 + $0x98] sm:$0xff]  }
  0x81   : > { %2339 = vmatpush3.bf16.msra.mxu1 %v2558_v28  ;;  %2208 = vmatpush3.bf16.msra.mxu0 %v2557_v30  ;;  %v2589_v28 = vld [vmem:[#allocation9 + $0xb8] sm:$0xff]  }
  0x82   : > { %2340 = vmatprep.subr.bf16.mxu1 %v2856_v0  ;;  %2209 = vmatprep.subr.bf16.mxu0 %v2559_v34  ;;  %v2590_v30 = vld [vmem:[#allocation9 + $0x38] sm:$0xff]   ;;  %v2594_v34 = vld [vmem:[#allocation9 + $0x68] sm:$0xff]  }
  0x83   : > { %2354 = vmatprep.mubr.msk.bf16.mxu1 %vm2857_vm0, %v2856_v0 }
  0x85   : > { %2341 = vmatpush3.bf16.msra.mxu1 %v2561_v38  ;;  %2210 = vmatpush3.bf16.msra.mxu0 %v2560_v39  ;;  %v2597_v38 = vld [vmem:[#allocation9 + $0x60] sm:$0xff]   ;;  %v2604_v39 = vld [vmem:[#allocation9 + $0x90] sm:$0xff]  }
  0x86   : > { %2342 = vmatprep.subr.bf16.mxu1 %v2856_v0  ;;  %2211 = vmatprep.subr.bf16.mxu0 %v2562_v42  ;;  %v2607_v42 = vld [vmem:[#allocation9 + $0x88] sm:$0xff]  }
  0x89   : > { %2343 = vmatpush3.bf16.msra.mxu1 %v2564_v40  ;;  %2212 = vmatpush3.bf16.msra.mxu0 %v2563_v43  ;;  %v2599_v40 = vld [vmem:[#allocation9 + $0x20] sm:$0xff]   ;;  %v2602_v43 = vld [vmem:[#allocation9 + $0x18] sm:$0xff]  }
  0x8a   : > { %2344 = vmatprep.subr.bf16.mxu1 %v2856_v0  ;;  %2213 = vmatprep.subr.bf16.mxu0 %v2565_v45  ;;  %v2610_v45 = vld [vmem:[#allocation9 + $0x80] sm:$0xff]  }
  0x8d   : > { %2345 = vmatpush3.bf16.msra.mxu1 %v2567_v41  ;;  %2214 = vmatpush3.bf16.msra.mxu0 %v2566_v46  ;;  %v2600_v41 = vld [vmem:[#allocation9 + $0x58] sm:$0xff]   ;;  %v2605_v46 = vld [vmem:[#allocation9 + $0x10] sm:$0xff]  }
  0x8e   : > { %2346 = vmatprep.subr.bf16.mxu1 %v2856_v0  ;;  %2215 = vmatprep.subr.bf16.mxu0 %v2568_v48  ;;  %v2608_v48 = vld [vmem:[#allocation9 + $0x8] sm:$0xff]  }
  0x91   : > { %2347 = vmatpush3.bf16.msra.mxu1 %v2570_v44  ;;  %2216 = vmatpush3.bf16.msra.mxu0 %v2569_v49  ;;  %v2603_v44 = vld [vmem:[#allocation9 + $0x50] sm:$0xff]   ;;  %v2609_v49 = vld [vmem:[#allocation9 + $0x40] sm:$0xff]  }
  0x92   : > { %2348 = vmatprep.subr.bf16.mxu1 %v2856_v0  ;;  %2217 = vmatprep.subr.bf16.mxu0 %v2571_v51  ;;  %v2612_v51 = vld [vmem:[#allocation11 + $0x78] sm:$0xff]  }
  0x95   : > { %2349 = vmatpush3.bf16.msra.mxu1 %v2573_v47  ;;  %2218 = vmatpush3.bf16.msra.mxu0 %v2572_v52  ;;  %v2606_v47 = vld [vmem:[#allocation9 + $0x48] sm:$0xff]  }
  0x96   : > { %2350 = vmatprep.subr.bf16.mxu1 %v2856_v0  ;;  %2219 = vmatprep.subr.bf16.mxu0 %v2574_v54 }
  0x99   : > { %2351 = vmatpush3.bf16.msra.mxu1 %v2576_v50  ;;  %2220 = vmatpush3.bf16.msra.mxu0 %v2575_v55  ;;  %v2611_v50 = vld [vmem:[#allocation9] sm:$0xff]  }
  0x9a   : > { %2352 = vmatprep.subr.bf16.mxu1 %v2856_v0  ;;  %2221 = vmatprep.subr.bf16.mxu0 %v2577_v56 }
  0x9d   : > { %2353 = vmatpush3.bf16.msra.mxu1 %v2579_v53  ;;  %2222 = vmatpush3.bf16.msra.mxu0 %v2578_v57 }
  0x9e   : > { %2358 = vmatprep.subr.bf16.mxu0 %v2856_v0  ;;  %2247 = vmatprep.subr.bf16.mxu1 %v2588_v27  ;;  %v3127_v27 = vld [vmem:[#allocation2] sm:$0xff] }
 0x140   : > { %v800_v58 = vpop.f32.mrf.mxu1  ;;  %v2192_v59 = vpop.f32.mrf.mxu0 }
 0x142   : > { %v2336_v60 = vpop.f32.mrf.mxu1  ;;  %v2193_v62 = vpop.f32.mrf.mxu0 }
 0x143   : > { %v2194_v63 = vadd.f32 %v2193_v62, %v2192_v59  ;;  %v2080_v60 = vld [vmem:[%s3229_s4] ss:$0 sm:$0xff] }
 0x144   : > { %v803_v1 = vpop.f32.mrf.mxu1  ;;  %v2195_v2 = vpop.f32.mrf.mxu0 }
 0x145   : > { %v760_v3 = vadd.f32 %v2194_v63, %v2055_v61 }
 0x146   : > { %v2337_v4 = vpop.f32.mrf.mxu1  ;;  %v2196_v5 = vpop.f32.mrf.mxu0 }
 0x147   : > { %v801_v6 = vadd.f32 %v800_v58, %v760_v3  ;;  %v2197_v7 = vadd.f32 %v2196_v5, %v2195_v2  ;;  %v2113_v3 = vld [vmem:[%s3231_s6] ss:$0 sm:$0xff] }
 0x149   : > { %v807_v8 = vmax.f32 %v801_v6, 0.0  ;;  %v763_v9 = vadd.f32 %v2197_v7, %v2055_v61 }
 0x14b   : > { %809 = vst [vmem:[#allocation2 + $0x8] sm:$0xff] %v807_v8  ;;  %v804_v10 = vadd.f32 %v803_v1, %v763_v9 }
 0x14d   : > { %v808_v11 = vmax.f32 %v804_v10, 0.0 }
 0x14f   : > { %810 = vst [vmem:[#allocation2 + $0x10] sm:$0xff] %v808_v11  ;;  %v819_v12 = vpack.c.bf16 %v808_v11, %v807_v8 }
 0x151   : > { %2355 = vmatmul.mubr.bf16.vlgmr.msra.gmra.mxu1 %v819_v12 }
 0x152   : > { %v813_v13 = vld [vmem:[#allocation2 + $0x7] sm:$0xff]  ;;  %2248 = vmatpush3.bf16.msra.mxu1 %v2590_v30 }
 0x153   : > { %v811_v15 = vld [vmem:[#allocation2 + $0x6] sm:$0xff]  ;;  %2249 = vmatprep.subr.bf16.mxu1 %v2591_v31 }
 0x154   : > { %v2617_v30 = vld [vmem:[#allocation11 + $0x30] sm:$0xff]   ;;  %v2619_v31 = vld [vmem:[#allocation11 + $0xa8] sm:$0xff]  }
 0x156   : > { %v814_v14 = vld [vmem:[#allocation2 + $0xf] sm:$0xff]  ;;  %2250 = vmatpush3.bf16.msra.mxu1 %v2593_v33 }
 0x157   : > { %v812_v16 = vld [vmem:[#allocation2 + $0xe] sm:$0xff]  ;;  %v818_v17 = vpack.c.bf16 %v814_v14, %v813_v13  ;;  %2251 = vmatprep.subr.bf16.mxu1 %v2594_v34  ;;  %v2620_v34 = vld [vmem:[#allocation11 + $0x28] sm:$0xff]  }
 0x158   : > { %v817_v18 = vpack.c.bf16 %v812_v16, %v811_v15  ;;  %v2625_v33 = vld [vmem:[#allocation11 + $0x98] sm:$0xff]  }
 0x159   : > { %1051 = vmatprep.mubr.bf16.mxu0 %v818_v17  ;;  %v2613_v17 = vld [vmem:[#allocation11 + $0xb8] sm:$0xff]  }
 0x15a   : > { %1052 = vmatmul.mubr.bf16.vlgmr.msra.gmra.mxu0 %v817_v18 }
 0x15b   : > { %2359 = vmatpush3.bf16.msra.mxu0 %v2580_v19  ;;  %2374 = vmatprep.mubr.msk.bf16.mxu0 %vm2857_vm0, %v2856_v0  ;;  %v2616_v19 = vld [vmem:[#allocation11 + $0xb0] sm:$0xff]  }
 0x15c   : > { %2360 = vmatprep.subr.bf16.mxu0 %v2856_v0 }
 0x15f   : > { %2361 = vmatpush3.bf16.msra.mxu0 %v2581_v20 }
 0x160   : > { %2362 = vmatprep.subr.bf16.mxu0 %v2856_v0 }
 0x163   : > { %2363 = vmatpush3.bf16.msra.mxu0 %v2582_v21 }
 0x164   : > { %2364 = vmatprep.subr.bf16.mxu0 %v2856_v0 }
 0x167   : > { %2365 = vmatpush3.bf16.msra.mxu0 %v2583_v22 }
 0x168   : > { %2366 = vmatprep.subr.bf16.mxu0 %v2856_v0 }
 0x16b   : > { %2367 = vmatpush3.bf16.msra.mxu0 %v2584_v23 }
 0x16c   : > { %2368 = vmatprep.subr.bf16.mxu0 %v2856_v0 }
 0x16f   : > { %2369 = vmatpush3.bf16.msra.mxu0 %v2585_v24 }
 0x170   : > { %2370 = vmatprep.subr.bf16.mxu0 %v2856_v0 }
 0x173   : > { %2371 = vmatpush3.bf16.msra.mxu0 %v2586_v25 }
 0x174   : > { %2372 = vmatprep.subr.bf16.mxu0 %v2856_v0 }
 0x177   : > { %2373 = vmatpush3.bf16.msra.mxu0 %v2587_v26  ;;  %v2614_v26 = vld [vmem:[#allocation11 + $0x38] sm:$0xff]  }
 0x178   : > { %2378 = vmatprep.subr.bf16.mxu0 %v2856_v0 }
 0x17a   : > { %2375 = vmatmul.mubr.bf16.vlgmr.msra.gmra.mxu0 %v3076_v29  ;;  %v2596_v29 = vld [vmem:[#allocation9 + $0x28] sm:$0xff]  }
 0x17b   : > { %2394 = vmatprep.mubr.msk.bf16.mxu0 %vm2857_vm0, %v2856_v0  ;;  %2379 = vmatpush3.bf16.msra.mxu0 %v2589_v28  ;;  %v2615_v28 = vld [vmem:[#allocation11 + $0x70] sm:$0xff]  }
 0x17c   : > { %2380 = vmatprep.subr.bf16.mxu0 %v2856_v0  ;;  %2252 = vmatpush3.bf16.msra.mxu1 %v2596_v29  ;;  %v2628_v29 = vld [vmem:[#allocation11 + $0x90] sm:$0xff]  }
 0x17d   : > { %2253 = vmatprep.subr.bf16.mxu1 %v2597_v38  ;;  %v2631_v38 = vld [vmem:[#allocation11 + $0x88] sm:$0xff]  }
 0x17f   : > { %2381 = vmatpush3.bf16.msra.mxu0 %v2592_v32  ;;  %v2618_v32 = vld [vmem:[#allocation11 + $0x68] sm:$0xff]  }
 0x180   : > { %2382 = vmatprep.subr.bf16.mxu0 %v2856_v0  ;;  %2254 = vmatpush3.bf16.msra.mxu1 %v2599_v40  ;;  %v2627_v40 = vld [vmem:[#allocation11 + $0x50] sm:$0xff]  }
 0x181   : > { %2255 = vmatprep.subr.bf16.mxu1 %v2600_v41  ;;  %v2634_v41 = vld [vmem:[#allocation11 + $0x80] sm:$0xff]  }
 0x183   : > { %2383 = vmatpush3.bf16.msra.mxu0 %v2595_v35  ;;  %v2621_v35 = vld [vmem:[#allocation11 + $0x60] sm:$0xff]  }
 0x184   : > { %2384 = vmatprep.subr.bf16.mxu0 %v2856_v0  ;;  %2256 = vmatpush3.bf16.msra.mxu1 %v2602_v43  ;;  %v2630_v43 = vld [vmem:[#allocation11 + $0x48] sm:$0xff]  }
 0x185   : > { %2257 = vmatprep.subr.bf16.mxu1 %v2603_v44  ;;  %v2632_v44 = vld [vmem:[#allocation11 + $0x8] sm:$0xff]  }
 0x187   : > { %2385 = vmatpush3.bf16.msra.mxu0 %v2598_v36  ;;  %v2623_v36 = vld [vmem:[#allocation11 + $0x20] sm:$0xff]  }
 0x188   : > { %2386 = vmatprep.subr.bf16.mxu0 %v2856_v0  ;;  %2258 = vmatpush3.bf16.msra.mxu1 %v2605_v46  ;;  %v2635_v46 = vld [vmem:[#allocation11] sm:$0xff]  }
 0x189   : > { %2259 = vmatprep.subr.bf16.mxu1 %v2606_v47 }
 0x18b   : > { %2387 = vmatpush3.bf16.msra.mxu0 %v2601_v37  ;;  %v2624_v37 = vld [vmem:[#allocation11 + $0x58] sm:$0xff]  }
 0x18c   : > { %2388 = vmatprep.subr.bf16.mxu0 %v2856_v0  ;;  %2260 = vmatpush3.bf16.msra.mxu1 %v2608_v48 }
 0x18d   : > { %2261 = vmatprep.subr.bf16.mxu1 %v2609_v49 }
 0x18f   : > { %2389 = vmatpush3.bf16.msra.mxu0 %v2604_v39  ;;  %v2626_v39 = vld [vmem:[#allocation11 + $0x18] sm:$0xff]  }
 0x190   : > { %2390 = vmatprep.subr.bf16.mxu0 %v2856_v0  ;;  %2262 = vmatpush3.bf16.msra.mxu1 %v2611_v50 }
 0x191   : > { %2278 = vmatprep.subr.bf16.mxu1 %v2612_v51 }
 0x193   : > { %2391 = vmatpush3.bf16.msra.mxu0 %v2607_v42  ;;  %v2629_v42 = vld [vmem:[#allocation11 + $0x10] sm:$0xff]  }
 0x194   : > { %2392 = vmatprep.subr.bf16.mxu0 %v2856_v0 }
 0x197   : > { %2393 = vmatpush3.bf16.msra.mxu0 %v2610_v45  ;;  %v2633_v45 = vld [vmem:[#allocation11 + $0x40] sm:$0xff]  }
 0x198   : > { %2398 = vmatprep.subr.bf16.mxu0 %v2856_v0 }
 0x211   : > { %v1094_v52 = vpop.f32.mrf.mxu1 }
 0x213   : > { %v2356_v53 = vpop.f32.mrf.mxu1 }
 0x215   : > { %v1097_v54 = vpop.f32.mrf.mxu1 }
 0x217   : > { %v2357_v55 = vpop.f32.mrf.mxu1 }
 0x21a   : > { %v2223_v56 = vpop.f32.mrf.mxu0 }
 0x21c   : > { %v2224_v57 = vpop.f32.mrf.mxu0 }
 0x21d   : > { %v2225_v59 = vadd.f32 %v2224_v57, %v2223_v56 }
 0x21e   : > { %v2226_v58 = vpop.f32.mrf.mxu0 }
 0x21f   : > { %v1054_v62 = vadd.f32 %v2225_v59, %v2080_v60 }
 0x220   : > { %v2227_v61 = vpop.f32.mrf.mxu0 }
 0x221   : > { %v2228_v63 = vadd.f32 %v2227_v61, %v2226_v58  ;;  %v1095_v1 = vadd.f32 %v1094_v52, %v1054_v62  ;;  %v2114_v52 = vld [vmem:[%s3233_s8] ss:$0 sm:$0xff] }
 0x223   : > { %v1057_v2 = vadd.f32 %v2228_v63, %v2080_v60  ;;  %v1101_v6 = vmax.f32 %v1095_v1, 0.0 }
 0x225   : > { %v1098_v5 = vadd.f32 %v1097_v54, %v1057_v2 }
 0x227   : > { %v1102_v12 = vmax.f32 %v1098_v5, 0.0 }
 0x23a   : > { %v1202_v4 = vpop.f32.mrf.mxu0 }
 0x23b   : > { %v1216_v7 = vadd.f32 %v2113_v3, %v1202_v4 }
 0x23c   : > { %v2376_v8 = vpop.f32.mrf.mxu0 }
 0x23d   : > { %v1218_v9 = vadd.f32 %v1216_v7, %v1101_v6  ;;  %v2636_v8 = vld [vmem:[%s3236_s11 + $0x38] sm:$0xff]  }
 0x23e   : > { %v1205_v10 = vpop.f32.mrf.mxu0 }
 0x23f   : > { %v1220_v11 = vmax.f32 %v1218_v9, 0.0  ;;  %v1217_v13 = vadd.f32 %v2113_v3, %v1205_v10  ;;  %v2637_v9 = vld [vmem:[%s3236_s11 + $0x30] sm:$0xff]   ;;  %v2638_v10 = vld [vmem:[%s3236_s11 + $0x28] sm:$0xff]  }
 0x240   : > { %v2377_v14 = vpop.f32.mrf.mxu0 }
 0x241   : > { %1222 = vst [vmem:[#allocation2 + $0x8] sm:$0xff] %v1220_v11  ;;  %v1219_v15 = vadd.f32 %v1217_v13, %v1102_v12  ;;  %v2640_v12 = vld [vmem:[%s3236_s11 + $0x18] sm:$0xff]   ;;  %v2641_v13 = vld [vmem:[%s3236_s11 + $0x10] sm:$0xff]   ;;  %v2642_v14 = vld [vmem:[%s3236_s11 + $0x8] sm:$0xff]  }
 0x243   : > { %v3120_v16 = vmax.f32 %v1219_v15, 0.0  ;;  %v2643_v15 = vld [vmem:[%s3236_s11] sm:$0xff]  }
 0x245   : > { %1223 = vst [vmem:[#allocation2 + $0x10] sm:$0xff] %v3120_v16  ;;  %v1232_v18 = vpack.c.bf16 %v3120_v16, %v1220_v11  ;;  %v2639_v11 = vld [vmem:[%s3236_s11 + $0x20] sm:$0xff]  }
 0x247   : > { %2395 = vmatmul.mubr.bf16.vlgmr.msra.gmra.mxu0 %v1232_v18 }
 0x248   : > { %2399 = vmatpush3.bf16.msra.mxu0 %v2613_v17  ;;  %2414 = vmatprep.mubr.msk.bf16.mxu0 %vm2857_vm0, %v2856_v0  ;;  %v1226_v20 = vld [vmem:[#allocation2 + $0x6] sm:$0xff] }
 0x249   : > { %2400 = vmatprep.subr.bf16.mxu0 %v2856_v0  ;;  %v1224_v22 = vld [vmem:[#allocation2 + $0x4] sm:$0xff]  ;;  %v2622_v0 = vld [vmem:[#allocation11 + $0xa0] sm:$0xff]  }
 0x24c   : > { %v1227_v21 = vld [vmem:[#allocation2 + $0xe] sm:$0xff]  ;;  %2401 = vmatpush3.bf16.msra.mxu0 %v2616_v19 }
 0x24d   : > { %v1225_v23 = vld [vmem:[#allocation2 + $0xc] sm:$0xff]  ;;  %v1231_v24 = vpack.c.bf16 %v1227_v21, %v1226_v20  ;;  %2402 = vmatprep.subr.bf16.mxu0 %v3127_v27 }
 0x24e   : > { %v1230_v25 = vpack.c.bf16 %v1225_v23, %v1224_v22 }
 0x24f   : > { %1464 = vmatprep.mubr.bf16.mxu1 %v1231_v24  ;;  %v2139_v24 = vld [vmem:[%s3235_s10] ss:$0 sm:$0xff] }
 0x250   : > { %1465 = vmatmul.mubr.bf16.vlgmr.msra.gmra.mxu1 %v1230_v25  ;;  %2403 = vmatpush3.bf16.msra.mxu0 %v2619_v31 }
 0x251   : > { %2279 = vmatpush3.bf16.msra.mxu1 %v2614_v26  ;;  %2404 = vmatprep.subr.bf16.mxu0 %v3127_v27 }
 0x252   : > { %2280 = vmatprep.subr.bf16.mxu1 %v2615_v28 }
 0x254   : > { %2405 = vmatpush3.bf16.msra.mxu0 %v2622_v0 }
 0x255   : > { %2281 = vmatpush3.bf16.msra.mxu1 %v2617_v30  ;;  %2406 = vmatprep.subr.bf16.mxu0 %v3127_v27 }
 0x256   : > { %2282 = vmatprep.subr.bf16.mxu1 %v2618_v32 }
 0x258   : > { %2407 = vmatpush3.bf16.msra.mxu0 %v2625_v33 }
 0x259   : > { %2283 = vmatpush3.bf16.msra.mxu1 %v2620_v34  ;;  %2408 = vmatprep.subr.bf16.mxu0 %v3127_v27 }
 0x25a   : > { %2284 = vmatprep.subr.bf16.mxu1 %v2621_v35  ;;  %v1826_v35 = vld [vmem:[%s3237_s12] sm:$0x1] }
 0x25c   : > { %2409 = vmatpush3.bf16.msra.mxu0 %v2628_v29 }
 0x25d   : > { %2285 = vmatpush3.bf16.msra.mxu1 %v2623_v36  ;;  %2410 = vmatprep.subr.bf16.mxu0 %v3127_v27 }
 0x25e   : > { %2286 = vmatprep.subr.bf16.mxu1 %v2624_v37 }
 0x260   : > { %2411 = vmatpush3.bf16.msra.mxu0 %v2631_v38 }
 0x261   : > { %2287 = vmatpush3.bf16.msra.mxu1 %v2626_v39  ;;  %2412 = vmatprep.subr.bf16.mxu0 %v3127_v27 }
 0x262   : > { %2288 = vmatprep.subr.bf16.mxu1 %v2627_v40 }
 0x264   : > { %2413 = vmatpush3.bf16.msra.mxu0 %v2634_v41 }
 0x265   : > { %2289 = vmatpush3.bf16.msra.mxu1 %v2629_v42 }
 0x266   : > { %2290 = vmatprep.subr.bf16.mxu1 %v2630_v43 }
 0x269   : > { %2291 = vmatpush3.bf16.msra.mxu1 %v2632_v44 }
 0x26a   : > { %2292 = vmatprep.subr.bf16.mxu1 %v2633_v45 }
 0x26d   : > { %2293 = vmatpush3.bf16.msra.mxu1 %v2635_v46 }
 0x26e   : > { %2418 = vmatprep.subr.bf16.mxu1 %v3127_v27 }
 0x307   : > { %v1507_v47 = vpop.f32.mrf.mxu0 }
 0x309   : > { %v2396_v48 = vpop.f32.mrf.mxu0 }
 0x30b   : > { %v1510_v49 = vpop.f32.mrf.mxu0 }
 0x30d   : > { %v2397_v50 = vpop.f32.mrf.mxu0 }
 0x310   : > { %v2263_v51 = vpop.f32.mrf.mxu1 }
 0x312   : > { %v2264_v53 = vpop.f32.mrf.mxu1 }
 0x313   : > { %v2265_v54 = vadd.f32 %v2264_v53, %v2263_v51 }
 0x314   : > { %v2266_v55 = vpop.f32.mrf.mxu1 }
 0x315   : > { %v1467_v56 = vadd.f32 %v2265_v54, %v2114_v52 }
 0x316   : > { %v2267_v57 = vpop.f32.mrf.mxu1 }
 0x317   : > { %v1508_v58 = vadd.f32 %v1507_v47, %v1467_v56  ;;  %v2268_v59 = vadd.f32 %v2267_v57, %v2266_v55 }
 0x319   : > { %v1514_v60 = vmax.f32 %v1508_v58, 0.0  ;;  %v1470_v61 = vadd.f32 %v2268_v59, %v2114_v52 }
 0x31b   : > { %1516 = vst [vmem:[#allocation2 + $0x8] sm:$0xff] %v1514_v60  ;;  %v1511_v62 = vadd.f32 %v1510_v49, %v1470_v61 }
 0x31d   : > { %v1515_v63 = vmax.f32 %v1511_v62, 0.0 }
 0x31f   : > { %1517 = vst [vmem:[#allocation2 + $0x10] sm:$0xff] %v1515_v63  ;;  %v1526_v1 = vpack.c.bf16 %v1515_v63, %v1514_v60 }
 0x321   : > { %2415 = vmatmul.mubr.bf16.vlgmr.msra.gmra.mxu0 %v1526_v1 }
 0x322   : > { %v1520_v2 = vld [vmem:[#allocation2 + $0x6] sm:$0xff] }
 0x323   : > { %v1518_v4 = vld [vmem:[#allocation2 + $0x4] sm:$0xff] }
 0x326   : > { %v1521_v3 = vld [vmem:[#allocation2 + $0xe] sm:$0xff] }
 0x327   : > { %v1519_v5 = vld [vmem:[#allocation2 + $0xc] sm:$0xff]  ;;  %v1525_v6 = vpack.c.bf16 %v1521_v3, %v1520_v2 }
 0x328   : > { %v1524_v7 = vpack.c.bf16 %v1519_v5, %v1518_v4 }
 0x329   : > { %1758 = vmatprep.mubr.bf16.mxu1 %v1525_v6 }
 0x32a   : > { %1759 = vmatmul.mubr.bf16.vlgmr.msra.gmra.mxu1 %v1524_v7 }
 0x32b   : > { %2419 = vmatpush3.bf16.msra.mxu1 %v2636_v8  ;;  %2434 = vmatprep.mubr.msk.bf16.mxu1 %vm2857_vm0, %v3127_v27 }
 0x32c   : > { %2420 = vmatprep.subr.bf16.mxu1 %v3127_v27 }
 0x32f   : > { %2421 = vmatpush3.bf16.msra.mxu1 %v2637_v9 }
 0x330   : > { %2422 = vmatprep.subr.bf16.mxu1 %v3127_v27 }
 0x333   : > { %2423 = vmatpush3.bf16.msra.mxu1 %v2638_v10 }
 0x334   : > { %2424 = vmatprep.subr.bf16.mxu1 %v3127_v27 }
 0x337   : > { %2425 = vmatpush3.bf16.msra.mxu1 %v2639_v11 }
 0x338   : > { %2426 = vmatprep.subr.bf16.mxu1 %v3127_v27 }
 0x33b   : > { %2427 = vmatpush3.bf16.msra.mxu1 %v2640_v12 }
 0x33c   : > { %2428 = vmatprep.subr.bf16.mxu1 %v3127_v27 }
 0x33f   : > { %2429 = vmatpush3.bf16.msra.mxu1 %v2641_v13 }
 0x340   : > { %2430 = vmatprep.subr.bf16.mxu1 %v3127_v27 }
 0x343   : > { %2431 = vmatpush3.bf16.msra.mxu1 %v2642_v14 }
 0x344   : > { %2432 = vmatprep.subr.bf16.mxu1 %v3127_v27 }
 0x347   : > { %2433 = vmatpush3.bf16.msra.mxu1 %v2643_v15 }
 0x3e1   : > { %v1800_v17 = vpop.f32.mrf.mxu0 }
 0x3e3   : > { %v2416_v18 = vpop.f32.mrf.mxu0 }
 0x3e5   : > { %v1802_v19 = vpop.f32.mrf.mxu0 }
 0x3e7   : > { %v2417_v20 = vpop.f32.mrf.mxu0 }
 0x3ea   : > { %v2294_v21 = vpop.f32.mrf.mxu1 }
 0x3ec   : > { %v2295_v22 = vpop.f32.mrf.mxu1 }
 0x3ee   : > { %v2297_v23 = vpop.f32.mrf.mxu1 }
 0x3f0   : > { %v2298_v25 = vpop.f32.mrf.mxu1 }
 0x3f1   : > { %v2299_v26 = vadd.f32 %v2298_v25, %v2297_v23 }
 0x3f3   : > { %v1763_v27 = vadd.f32 %v2299_v26, %v2139_v24 }
 0x3f5   : > { %v1803_v28 = vadd.f32 %v1802_v19, %v1763_v27 }
 0x3f7   : > { %v1806_v30 = vmax.f32 %v1803_v28, 0.0 }
 0x3f9   : > { %v1807_v31 = vadd.f32 %v1806_v30, %v3120_v16 }
 0x3fb   : > { %v1808_v0 = vmax.f32 %v1807_v31, 0.0 }
 0x3fd   : > { %v1809_v32 = vpack.c.bf16 %v1808_v0, %v1808_v0 }
 0x3ff   : > { %v1828_v33 = vshrl.u32 %v1809_v32, 16 }
 0x401   : > { %v1830_v34 = vrot.slane %v1828_v33, 3 }
 0x403   : > { %2435 = vmatmul.mubr.bf16.vlgmr.msra.gmra.mxu1 %v1830_v34 }
 0x4c3   : > { %v1914_v29 = vpop.f32.mrf.mxu1 }
 0x4c4   : > { %v1915_v36 = vadd.f32 %v1914_v29, %v1826_v35 }
 0x4c5   : > { %v2436_v16 = vpop.f32.mrf.mxu1 }
 0x4c6   : > { %1920 = vst [vmem:[%s505_s15] sm:$0x1] %v1915_v36 }
 0x4c7   : > { %v1917_v37 = vpop.f32.mrf.mxu1 }
 0x4c8   : > { %2788 = shalt.err (!%p2785_p0)
}
 0x4c9   : > { %s2789_s23 = scalar_lea.hbm %s3184_s19, 16  ;;  %s2793_s22 = scalar_lea.hbm %s3238_s13, 32 }
 0x4ca   : > { %p2790_p3 = scmp.ne.s32.totalorder %s3184_s19, %s2789_s23  ;;  %p2794_p12 = scmp.lt.s32.totalorder %s3184_s19, %s3238_s13 }
 0x4cb   : > { %p2795_p10 = scmp.lt.s32.totalorder %s2793_s22, %s2789_s23 }
 0x4cc   : > { %p2791_p1 = pnand %p2790_p3, %p2967_p5 }
 0x4cd   : > { %p2796_p4 = por %p2795_p10, %p2794_p12 }
 0x4ce   : > { %p2792_p2 = pneg %p2791_p1 }
 0x4d0   : > { %p2797_p9 = pnand %p2796_p4, %p2792_p2 }
 0x4d2   : > { %2800 = shalt.err (!%p2797_p9)
}
 0x4d3   : > { %2458 = dma.vmem_to_hbm [thread:$0]  (%p2967_p5), %s3186_s27, 16, %s3184_s19, %s1922_s3   ;;  %v2437_v38 = vpop.f32.mrf.mxu1 }
 0x4d4 PF: > { %s3263_s16 = sld [smem:[#allocation17_spill]]  ;;  %p2490_p8 = scmp.ge.s32.totalorder %s2847_s28, 2 }
 0x4d6   : > { %p2477_p7 = pnand %p2490_p8, %p2971_p6 }
 0x4d8   : > { %p2478_p11 = pneg %p2477_p7 }
 0x4da   : > { %s1946_s25 = sand.u32 1, %s3263_s16  }
 0x4db   : > { %s1947_s29 = scalar_lea.sflag [#allocation5], %s1946_s25 }
 0x4dc   : > { %2830 = dma.done.wait (%p2478_p11), %s1947_s29, 16  }
 0x4dd   : > { %2832 = vsyncadd (%p2478_p11), %s1947_s29, 4294967280  ;;  %s3265_s28 = sld [smem:[#allocation19_spill]]  ;;  %s3268_s25 = smov %s2839_s26 }
 0x4de   : > { %s3266_s17 = sld [smem:[#allocation18_spill]] }
 0x4df   : > { %s3267_s27 = sld [smem:[#allocation20_spill]] }
 0x4e3   : > { %p26_p13 = scmp.ge.s32.totalorder %s3265_s28, 4  }
 0x4e4   : > { %s3269_s26 = smov %s3266_s17 }
 0x4e5   :  { %28 = sbr.rel (!%p26_p13) target bundleno = 8 (0x8), region = 128 }
 0x4ea   :  { %1951 = vsyncpa [#allocation4], 1 }
 0x4eb   :  { %1953 = vsyncpa [#allocation4 + $0x1], 1 }
 0x4ec   :  { %1954 = vsyncpa [#allocation7], 1 }
 0x4ed   :  { %1955 = vsyncpa [#allocation10], 1 }
 0x4ee   :  { %1956 = vsyncpa [#allocation5], 1 }
 0x4ef   :  { %1958 = vsyncpa [#allocation5 + $0x1], 1 }

</bundles_post_ra>
